<compile_context>
chip_gen: v6e
topology: v6e:2x2x1
jax: 0.10.0
libtpu: 0.0.40
codegen_flags: <defaults>
</compile_context>

<pallas_src>
import jax
import jax.numpy as jnp
from jax import lax
from jax.experimental import pallas as pl
from jax.experimental.pallas import tpu as pltpu

EPS = 1e-12  # F.normalize default eps


def _cosine_cls_kernel(x_ref, w_ref, o_ref, xn_ref):
    # x_ref:  [Bt, N, C]  raw features (one block of batch elements)
    # w_ref:  [C, Tt]     pre-normalized weights with scaler folded in
    # o_ref:  [Bt, N, Tt] output logits block
    # xn_ref: [Bt, N, C]  VMEM scratch: normalized x, reused across T tiles
    @pl.when(pl.program_id(1) == 0)
    def _():
        x = x_ref[...]
        # F.normalize(x, p=2, dim=1): norm over the token axis (axis=1 here).
        nsq = jnp.sum(x * x, axis=1, keepdims=True)            # [Bt, 1, C]
        inv = lax.rsqrt(jnp.maximum(nsq, EPS * EPS))           # EUP rsqrt
        xn_ref[...] = x * inv

    bt, n, c = xn_ref.shape
    tt = w_ref.shape[1]
    # One MXU-sized matmul per step: [Bt*N, C] @ [C, Tt] -> [Bt*N, Tt].
    xn = xn_ref[...].reshape(bt * n, c)
    out = jnp.dot(xn, w_ref[...], preferred_element_type=jnp.float32)
    o_ref[...] = out.reshape(bt, n, tt).astype(o_ref.dtype)


def _pick_bt(B, N, C, bytes_budget=2 << 20):
    """Largest divisor of B (<= 8) whose x block stays within a VMEM budget."""
    per_b = max(N * C * 4, 1)
    bt = int(min(B, max(1, bytes_budget // per_b), 8))
    while B % bt:
        bt -= 1
    return bt


def _pick_tt(t_pad):
    """Largest of (512, 256, 128) dividing the padded class count."""
    for tt in (512, 256, 128):
        if t_pad % tt == 0:
            return tt
    return t_pad  # unreachable: t_pad is always a multiple of 128


def cosine_classifier_forward(x, weights, scaler=10.0):
    """x: [B, N, C]; weights: list of [c_i, C] arrays (one per head)."""
    B, N, C = x.shape
    x = x.astype(jnp.float32)

    # ---- batch-invariant glue (done once, outside the grid) ---------------
    # Reference loop order: heads 1..K-1 first, then head 0.
    w_all = jnp.concatenate(list(weights[1:]) + [weights[0]], axis=0)  # [T, C]
    T = w_all.shape[0]
    # F.normalize(W, p=2, dim=1): per-class norm over channels; fold scaler.
    w_norm = jnp.sqrt(jnp.sum(w_all * w_all, axis=1, keepdims=True))
    w_ct = (scaler * (w_all / jnp.maximum(w_norm, EPS))).T             # [C, T]
    # Lane-dense output: pad class dim to a multiple of 128 (zero columns).
    T_pad = ((T + 127) // 128) * 128
    if T_pad != T:
        w_ct = jnp.pad(w_ct, ((0, 0), (0, T_pad - T)))
    w_ct = w_ct.astype(jnp.float32)

    Bt = _pick_bt(B, N, C)
    Tt = _pick_tt(T_pad)
    grid = (B // Bt, T_pad // Tt)

    out = pl.pallas_call(
        _cosine_cls_kernel,
        out_shape=jax.ShapeDtypeStruct((B, N, T_pad), jnp.float32),
        grid_spec=pltpu.PrefetchScalarGridSpec(
            num_scalar_prefetch=0,
            grid=grid,
            in_specs=[
                pl.BlockSpec((Bt, N, C), lambda b, t: (b, 0, 0)),
                pl.BlockSpec((C, Tt), lambda b, t: (0, t)),
            ],
            out_specs=pl.BlockSpec((Bt, N, Tt), lambda b, t: (b, 0, t)),
            scratch_shapes=[pltpu.VMEM((Bt, N, C), jnp.float32)],
        ),
        compiler_params=pltpu.CompilerParams(
            dimension_semantics=("parallel", "arbitrary")),
    )(x, w_ct)

    return out[:, :, :T]


def _reference(x, weights, scaler=10.0):
    # Pure-JAX replica of the PyTorch forward (for verification).
    xn = x / jnp.maximum(jnp.sqrt(jnp.sum(x * x, axis=1, keepdims=True)), EPS)
    outs = []
    for w in list(weights[1:]) + [weights[0]]:
        wn = w / jnp.maximum(jnp.sqrt(jnp.sum(w * w, axis=1, keepdims=True)), EPS)
        outs.append(scaler * jnp.einsum("bnc,tc->bnt", xn, wn))
    return jnp.concatenate(outs, axis=2)


if __name__ == "__main__":
    # Small, module-consistent shapes.
    B, N, C = 2, 8, 32
    classes = [3, 2, 4]   # nn.ModuleList([Linear(C, c, bias=False) for c in classes])
    scaler = 10.0

    key = jax.random.PRNGKey(0)
    key, xk = jax.random.split(key)
    x = jax.random.normal(xk, (B, N, C), dtype=jnp.float32)

    weights = []
    for c in classes:
        key, wk = jax.random.split(key)
        bound = 1.0 / (C ** 0.5)  # nn.Linear weight shape: [c, C]
        weights.append(jax.random.uniform(wk, (c, C), jnp.float32, -bound, bound))

    out = cosine_classifier_forward(x, weights, scaler)
    out = jax.block_until_ready(out)

    ref = _reference(x, weights, scaler)
    assert out.shape == (B, N, sum(classes)), out.shape
    assert jnp.allclose(out, ref, atol=1e-4, rtol=1e-4), float(
        jnp.max(jnp.abs(out - ref)))

    print("KERNEL_OK")
</pallas_src>

<mosaic_0001>
module attributes {stable_mosaic.version = 11 : i64} {
  func.func @_cosine_cls_kernel(%arg0: i32, %arg1: i32, %arg2: memref<2x8x32xf32, #tpu.memory_space<vmem>>, %arg3: memref<32x128xf32, #tpu.memory_space<vmem>>, %arg4: memref<2x8x128xf32, #tpu.memory_space<vmem>>, %arg5: memref<2x8x32xf32, #tpu.memory_space<vmem>>) attributes {dimension_semantics = [#tpu.dimension_semantics<parallel>, #tpu.dimension_semantics<arbitrary>], iteration_bounds = array<i64: 1, 1>, scalar_prefetch = 0 : i64, scratch_operands = 1 : i64, tpu.core_type = #tpu.core_type<tc>, window_params = [{transform_indices = @transform_0, window_bounds = array<i64: 2, 8, 32>}, {transform_indices = @transform_1, window_bounds = array<i64: 32, 128>}, {transform_indices = @transform_2, window_bounds = array<i64: 2, 8, 128>}]} {
    %c0_i32 = arith.constant 0 : i32
    %0 = arith.cmpi eq, %arg1, %c0_i32 : i32
    %1 = arith.extui %0 : i1 to i32
    %c0_i32_0 = arith.constant 0 : i32
    %2 = arith.cmpi ne, %1, %c0_i32_0 : i32
    scf.if %2 {
      %c0_8 = arith.constant 0 : index
      %c0_9 = arith.constant 0 : index
      %c0_10 = arith.constant 0 : index
      %9 = vector.load %arg2[%c0_8, %c0_9, %c0_10] : memref<2x8x32xf32, #tpu.memory_space<vmem>>, vector<2x8x32xf32>
      %10 = arith.mulf %9, %9 : vector<2x8x32xf32>
      %cst_11 = arith.constant dense<0.000000e+00> : vector<2x32xf32>
      %11 = vector.multi_reduction <add>, %10, %cst_11 [1] : vector<2x8x32xf32> to vector<2x32xf32>
      %12 = vector.shape_cast %11 : vector<2x32xf32> to vector<2x1x32xf32>
      %cst_12 = arith.constant 1.000000e-24 : f32
      %13 = vector.broadcast %cst_12 : f32 to vector<2x1x32xf32>
      %14 = arith.maximumf %12, %13 : vector<2x1x32xf32>
      %15 = math.rsqrt %14 : vector<2x1x32xf32>
      %16 = vector.broadcast %15 : vector<2x1x32xf32> to vector<2x8x32xf32>
      %17 = arith.mulf %9, %16 : vector<2x8x32xf32>
      %c0_13 = arith.constant 0 : index
      %c0_14 = arith.constant 0 : index
      %c0_15 = arith.constant 0 : index
      %18 = vector.load %arg5[%c0_13, %c0_14, %c0_15] : memref<2x8x32xf32, #tpu.memory_space<vmem>>, vector<2x8x32xf32>
      tpu.vector_store %arg5[%c0_13, %c0_14, %c0_15], %17 {strides = array<i32>} : memref<2x8x32xf32, #tpu.memory_space<vmem>>, vector<2x8x32xf32>,
    } else {
    }
    %c0 = arith.constant 0 : index
    %c0_1 = arith.constant 0 : index
    %c0_2 = arith.constant 0 : index
    %3 = vector.load %arg5[%c0, %c0_1, %c0_2] : memref<2x8x32xf32, #tpu.memory_space<vmem>>, vector<2x8x32xf32>
    %4 = vector.shape_cast %3 : vector<2x8x32xf32> to vector<16x32xf32>
    %c0_3 = arith.constant 0 : index
    %c0_4 = arith.constant 0 : index
    %5 = vector.load %arg3[%c0_3, %c0_4] : memref<32x128xf32, #tpu.memory_space<vmem>>, vector<32x128xf32>
    %cst = arith.constant dense<0.000000e+00> : vector<16x128xf32>
    %6 = tpu.matmul %4, %5, %cst {dimension_numbers = #tpu.dot_dimension_numbers<[1], [0], [0], [1], [0, 0, 1, 1], [], []>} : vector<16x32xf32>, vector<32x128xf32>, vector<16x128xf32> -> vector<16x128xf32>
    %7 = vector.shape_cast %6 : vector<16x128xf32> to vector<2x8x128xf32>
    %c0_5 = arith.constant 0 : index
    %c0_6 = arith.constant 0 : index
    %c0_7 = arith.constant 0 : index
    %8 = vector.load %arg4[%c0_5, %c0_6, %c0_7] : memref<2x8x128xf32, #tpu.memory_space<vmem>>, vector<2x8x128xf32>
    tpu.vector_store %arg4[%c0_5, %c0_6, %c0_7], %7 {strides = array<i32>} : memref<2x8x128xf32, #tpu.memory_space<vmem>>, vector<2x8x128xf32>,
    return
  }
  func.func @transform_0(%arg0: i32, %arg1: i32) -> (i32, i32, i32) {
    %c0_i32 = arith.constant 0 : i32
    %c0_i32_0 = arith.constant 0 : i32
    %c0_i32_1 = arith.constant 0 : i32
    return %arg0, %c0_i32, %c0_i32_0 : i32, i32, i32
  }
  func.func @transform_1(%arg0: i32, %arg1: i32) -> (i32, i32) {
    %c0_i32 = arith.constant 0 : i32
    %c0_i32_0 = arith.constant 0 : i32
    return %c0_i32, %arg1 : i32, i32
  }
  func.func @transform_2(%arg0: i32, %arg1: i32) -> (i32, i32, i32) {
    %c0_i32 = arith.constant 0 : i32
    %c0_i32_0 = arith.constant 0 : i32
    return %arg0, %c0_i32, %arg1 : i32, i32, i32
  }
}

</mosaic_0001>

<bundles_post_ra>
// kernel: tpu_custom_call.1
= control target key start
LH: loop header
LB: loop body
LE: loop exit
PB: predicated region body
PF: predicated region fallthrough
CT: control target
= control target key end

     0   :  { %7 = vsyncpa [#allocation4], 0  ;;  %s317_s0 = inlined_call_operand.hbm [shape: f32[2,8,32], index: 0, kind: input, shape index: {}]   ;;  %s318_s1 = inlined_call_operand.hbm [shape: f32[32,128], index: 1, kind: input, shape index: {}]   ;;  %s319_s2 = inlined_call_operand.hbm [shape: f32[2,8,128], index: 2, kind: output, shape index: {}]  }
   0x1   :  { %8 = vsyncpa [#allocation7], 0 }
   0x2   :  { %9 = vsyncpa [#allocation5], 0  ;;  %s273_s9 = smov [#allocation3]  }
   0x3   :  { %s15_s10 = sshll.u32 %s273_s9, 4  ;;  %s16_s10 = int_to_ptr.vmem [resolvable:$true] %s15_s10 }
   0x4   :  { %s215_s11 = scalar_lea.vmem %s16_s10, 256  ;;  %p220_p1 = scmp.lt.s32.totalorder %s16_s10, %s16_s10 }
   0x5   :  { %p216_p0 = scmp.ne.s32.totalorder %s16_s10, %s215_s11  ;;  %p221_p2 = scmp.lt.s32.totalorder %s215_s11, %s215_s11 }
   0x7   :  { %p222_p3 = por %p221_p2, %p220_p1 }
   0x9   :  { %p223_p4 = pnand %p222_p3, %p216_p0 }
   0xb   :  { %226 = shalt.err (!%p223_p4)
}
   0xc   :  { %s274_s12 = smov 128   ;;  %s275_s13 = smov 8  }
   0xd   :  { %21 = dma.hbm_to_vmem [thread:$0]  %s317_s0, 256, %s16_s10, [#allocation4], %s274_s12, %s274_s12, %s275_s13  }
   0xe   :  { %s276_s16 = smov [#allocation6]  }
   0xf   :  { %s27_s17 = sshll.u32 %s276_s16, 4  ;;  %s28_s17 = int_to_ptr.vmem [resolvable:$true] %s27_s17 }
  0x10   :  { %s235_s18 = scalar_lea.vmem %s28_s17, 512  ;;  %p240_p6 = scmp.lt.s32.totalorder %s28_s17, %s28_s17 }
  0x11   :  { %p236_p5 = scmp.ne.s32.totalorder %s28_s17, %s235_s18  ;;  %p241_p7 = scmp.lt.s32.totalorder %s235_s18, %s235_s18 }
  0x13   :  { %p242_p8 = por %p241_p7, %p240_p6 }
  0x15   :  { %p243_p9 = pnand %p242_p8, %p236_p5 }
  0x17   :  { %246 = shalt.err (!%p243_p9)
}
  0x18   :  { %33 = dma.hbm_to_vmem [thread:$0]  %s318_s1, 512, %s28_s17, [#allocation7], %s274_s12, %s274_s12, %s275_s13  }
  0x19   :  { %267 = dma.done.wait [#allocation4], 256  }
  0x1a   :  { %268 = vsyncadd [#allocation4], 4294967040 }
  0x1b   :  { %269 = dma.done.wait [#allocation7], 512  }
  0x1c   :  { %270 = vsyncadd [#allocation7], 4294966784  ;;  %v76_v0 = vld [vmem:[#allocation6 + $0x18] sm:$0xff]  ;;  %v75_v1 = vld [vmem:[#allocation6 + $0x10] sm:$0xff]  ;;  %vm48_vm0 = vcmask 261120   ;;  %s277_s0 = smov [#allocation8]  }
  0x1d   :  { %187 = vmatprep.subr.mxu0 %v76_v0  ;;  %v44_v2 = vld [vmem:[#allocation3] sm:$0xff]  ;;  %v45_v3 = vld [vmem:[#allocation3 + $0x8] sm:$0xff]  ;;  %v74_v4 = vld [vmem:[#allocation6 + $0x8] sm:$0xff]  ;;  %s166_s1 = sshll.u32 %s277_s0, 4  ;;  %s167_s1 = int_to_ptr.vmem [resolvable:$true] %s166_s1 }
  0x1e   :  { %188 = vmatpush3.msra.mxu0 %v76_v0  ;;  %v46_v5 = vmul.f32 %v44_v2, %v44_v2  ;;  %v47_v6 = vmul.f32 %v45_v3, %v45_v3  ;;  %v73_v7 = vld [vmem:[#allocation6] sm:$0xff]  ;;  %s247_s21 = scalar_lea.vmem %s167_s1, 256  ;;  %p252_p11 = scmp.lt.s32.totalorder %s167_s1, %s167_s1 }
  0x1f   :  { %189 = vmatprep.subr.mxu0 %v75_v1  ;;  %p248_p10 = scmp.ne.s32.totalorder %s167_s1, %s247_s21  ;;  %p253_p12 = scmp.lt.s32.totalorder %s247_s21, %s247_s21 }
  0x20   :  { %190 = vmatpush3.msra.mxu0 %v75_v1  ;;  %v49_v8 = vsel %vm48_vm0, %v46_v5, 0.0  ;;  %v56_v9 = vsel %vm48_vm0, %v47_v6, 0.0 }
  0x21   :  { %191 = vmatprep.subr.mxu0 %v74_v4  ;;  %v50_v10 = vrot.slane %v49_v8, 4  ;;  %v57_v11 = vrot.slane %v56_v9, 4  ;;  %p254_p13 = por %p253_p12, %p252_p11 }
  0x22   :  { %192 = vmatpush3.msra.mxu0 %v74_v4 }
  0x23   :  { %193 = vmatprep.subr.mxu0 %v73_v7  ;;  %v51_v12 = vadd.f32 %v50_v10, %v49_v8  ;;  %v58_v13 = vadd.f32 %v57_v11, %v56_v9  ;;  %p255_p0 = pnand %p254_p13, %p248_p10 }
  0x24   :  { %194 = vmatpush3.msra.mxu0 %v73_v7 }
  0x25   :  { %v52_v14 = vrot.slane %v51_v12, 2  ;;  %v59_v15 = vrot.slane %v58_v13, 2 }
  0x27   :  { %v53_v16 = vadd.f32 %v52_v14, %v51_v12  ;;  %v60_v17 = vadd.f32 %v59_v15, %v58_v13 }
  0x29   :  { %v54_v18 = vrot.slane %v53_v16, 1  ;;  %v61_v19 = vrot.slane %v60_v17, 1 }
  0x2b   :  { %v55_v20 = vadd.f32 %v54_v18, %v53_v16  ;;  %v62_v21 = vadd.f32 %v61_v19, %v60_v17 }
  0x2d   :  { %v63_v22 = vmax.f32 %v55_v20, 1e-24  ;;  %v64_v23 = vmax.f32 %v62_v21, 1e-24 }
  0x2f   :  { %203 = vrsqrt.f32 %v63_v22 }
  0x30   :  { %205 = vrsqrt.f32 %v64_v23 }
  0x3c   :  { %v204_v24 = vpop.eup %203 }
  0x3d   :  { %v206_v25 = vpop.eup %205  ;;  %v67_v26 = vmul.f32 %v204_v24, %v44_v2 }
  0x3e   :  { %v68_v27 = vmul.f32 %v206_v25, %v45_v3 }
  0x3f   :  { %69 = vst.msk [vmem:[#allocation2] sm:$0xff] %vm48_vm0, %v67_v26 }
  0x40   :  { %70 = vst.msk [vmem:[#allocation2 + $0x8] sm:$0xff] %vm48_vm0, %v68_v27 }
  0x46   :  { %v71_v28 = vld [vmem:[#allocation2] sm:$0xff] }
  0x47   :  { %195 = vmatprep.mubr.msk.f32.mxu0 %vm48_vm0, %v71_v28  ;;  %v72_v29 = vld [vmem:[#allocation2 + $0x8] sm:$0xff] }
  0x48   :  { %196 = vmatmul.mubr.msk.f32.vlgmr.msra.gmra.mxu0 %vm48_vm0, %v72_v29 }
 0x108   :  { %v197_v30 = vpop.f32.mrf.mxu0 }
 0x109   :  { %160 = vst [vmem:[#allocation8 + $0x8] sm:$0xff] %v197_v30 }
 0x10a   :  { %v150_v31 = vpop.f32.mrf.mxu0 }
 0x10b   :  { %159 = vst [vmem:[#allocation8] sm:$0xff] %v150_v31 }
 0x10c   :  { %258 = shalt.err (!%p255_p0)
}
 0x10d   :  { %172 = dma.vmem_to_hbm [thread:$0]  %s167_s1, 256, %s319_s2, [#allocation5], %s274_s12, %s274_s12, %s275_s13  }
 0x10e   :  { %271 = dma.done.wait [#allocation5], 256  }
 0x10f   :  { %272 = vsyncadd [#allocation5], 4294967040 }
 0x110   :  { %176 = vsyncpa [#allocation4], 1 }
 0x111   :  { %177 = vsyncpa [#allocation7], 1 }
 0x112   :  { %178 = vsyncpa [#allocation5], 1 }

</bundles_post_ra>
